<compile_context>
chip_gen: v6e
topology: v6e:2x2x1
jax: 0.10.0
libtpu: 0.0.40
codegen_flags: <defaults>
</compile_context>

<pallas_src>
import jax
import jax.numpy as jnp
from jax.experimental import pallas as pl
from jax.experimental.pallas import tpu as pltpu

IN_FEATURES = 28 * 28   # 784
HIDDEN = 20
OUT = 2


def _mlp_kernel(x_ref, w1_ref, b1_ref, w2_ref, b2_ref, o_ref):
    # Layer 1: (TB, 784) @ (784, 20) on MXU, f32 accumulate.
    h = jnp.dot(x_ref[...], w1_ref[...], preferred_element_type=jnp.float32)
    h = h + b1_ref[...]                  # (1, HIDDEN) broadcasts over batch
    # Layer 2: (TB, 20) @ (20, 2), f32.
    y = jnp.dot(h, w2_ref[...], preferred_element_type=jnp.float32)
    y = y + b2_ref[...]                  # (1, OUT)
    o_ref[...] = y.astype(o_ref.dtype)


def mnist_model_forward(x_nchw, w1, b1, w2, b2, *, block_b=1024, use_bf16=True):
    """Forward pass of MNISTModel.

    x_nchw: (B, 1, 28, 28) float32 (PyTorch NCHW convention)
    w1: (784, 20), b1: (20,), w2: (20, 2), b2: (2,)
    returns logits: (B, 2) float32
    """
    B = x_nchw.shape[0]
    x_flat = x_nchw.reshape(B, -1)                    # Flatten, like nn.Flatten

    # Batch tile: large multiple of 8, but never larger than the (padded) batch.
    TB = min(block_b, max(8, ((B + 7) // 8) * 8))
    B_pad = pl.cdiv(B, TB) * TB
    if B_pad != B:
        x_flat = jnp.pad(x_flat, ((0, B_pad - B), (0, 0)))

    in_dtype = jnp.bfloat16 if use_bf16 else jnp.float32
    itemsize = 2 if use_bf16 else 4
    x_flat = x_flat.astype(in_dtype)
    w1c = w1.astype(in_dtype)
    b1_2d = b1.reshape(1, HIDDEN).astype(jnp.float32)
    w2c = w2.astype(jnp.float32)
    b2_2d = b2.reshape(1, OUT).astype(jnp.float32)

    grid = (B_pad // TB,)

    # Double-buffered x + out tiles, resident weights, plus slack.
    vmem_limit = int(
        2 * TB * IN_FEATURES * itemsize          # x tiles (double-buffered)
        + 2 * TB * OUT * 4                       # out tiles (double-buffered)
        + IN_FEATURES * HIDDEN * itemsize        # w1
        + (HIDDEN * OUT + HIDDEN + OUT) * 4      # w2, b1, b2
        + (8 << 20))                             # headroom

    out = pl.pallas_call(
        _mlp_kernel,
        out_shape=jax.ShapeDtypeStruct((B_pad, OUT), jnp.float32),
        grid=grid,
        in_specs=[
            pl.BlockSpec((TB, IN_FEATURES), lambda i: (i, 0)),       # x: tiled over batch
            pl.BlockSpec((IN_FEATURES, HIDDEN), lambda i: (0, 0)),   # w1: resident
            pl.BlockSpec((1, HIDDEN), lambda i: (0, 0)),             # b1: resident
            pl.BlockSpec((HIDDEN, OUT), lambda i: (0, 0)),           # w2: resident
            pl.BlockSpec((1, OUT), lambda i: (0, 0)),                # b2: resident
        ],
        out_specs=pl.BlockSpec((TB, OUT), lambda i: (i, 0)),
        compiler_params=pltpu.CompilerParams(
            dimension_semantics=("parallel",),
            vmem_limit_bytes=vmem_limit),
    )(x_flat, w1c, b1_2d, w2c, b2_2d)

    return out[:B]


def init_params(key):
    """Deterministic init matching torch.nn.Linear's default:
    U(-1/sqrt(in_features), 1/sqrt(in_features)) for weight and bias."""
    k1, k2, k3, k4 = jax.random.split(key, 4)
    bound1 = 1.0 / (IN_FEATURES ** 0.5)
    bound2 = 1.0 / (HIDDEN ** 0.5)
    # stored as (in, out) = torch weight transposed, so forward is x @ w + b
    w1 = jax.random.uniform(k1, (IN_FEATURES, HIDDEN), jnp.float32,
                            -bound1, bound1)
    b1 = jax.random.uniform(k2, (HIDDEN,), jnp.float32, -bound1, bound1)
    w2 = jax.random.uniform(k3, (HIDDEN, OUT), jnp.float32, -bound2, bound2)
    b2 = jax.random.uniform(k4, (OUT,), jnp.float32, -bound2, bound2)
    return w1, b1, w2, b2


if __name__ == "__main__":
    key = jax.random.PRNGKey(0)
    k_x, k_p = jax.random.split(key)

    B = 2
    x = jax.random.normal(k_x, (B, 1, 28, 28), jnp.float32)  # NCHW, like MNIST
    w1, b1, w2, b2 = init_params(k_p)

    logits = mnist_model_forward(x, w1, b1, w2, b2)
    logits = jax.block_until_ready(logits)
    assert logits.shape == (B, OUT)

    # Reference check in plain JAX, using the same bf16 quantization of the
    # bandwidth-dominant operands (x, w1) that the kernel uses, with f32 math.
    x_q = x.reshape(B, -1).astype(jnp.bfloat16).astype(jnp.float32)
    w1_q = w1.astype(jnp.bfloat16).astype(jnp.float32)
    ref = (x_q @ w1_q + b1) @ w2 + b2
    assert jnp.allclose(logits, ref, atol=2e-4, rtol=1e-3), "mismatch vs reference"

    # Also check the f32 (no-bf16) path exactly against the f32 reference.
    logits_f32 = jax.block_until_ready(
        mnist_model_forward(x, w1, b1, w2, b2, use_bf16=False))
    ref_f32 = (x.reshape(B, -1) @ w1 + b1) @ w2 + b2
    assert jnp.allclose(logits_f32, ref_f32, atol=1e-4, rtol=1e-4)

    # TODO(synk): CrossEntropyLoss / evaluate() are training utilities, not part
    # of forward(); not implemented as a kernel.
    print("KERNEL_OK")
</pallas_src>

<mosaic_0001>
module attributes {stable_mosaic.version = 11 : i64} {
  func.func @_mlp_kernel(%arg0: i32, %arg1: memref<8x784xbf16, #tpu.memory_space<vmem>>, %arg2: memref<784x20xbf16, #tpu.memory_space<vmem>>, %arg3: memref<1x20xf32, #tpu.memory_space<vmem>>, %arg4: memref<20x2xf32, #tpu.memory_space<vmem>>, %arg5: memref<1x2xf32, #tpu.memory_space<vmem>>, %arg6: memref<8x2xf32, #tpu.memory_space<vmem>>) attributes {dimension_semantics = [#tpu.dimension_semantics<parallel>], iteration_bounds = array<i64: 1>, scalar_prefetch = 0 : i64, scratch_operands = 0 : i64, tpu.core_type = #tpu.core_type<tc>, window_params = [{transform_indices = @transform_0, window_bounds = array<i64: 8, 784>}, {pipeline_mode = #tpu.pipeline_mode<synchronous>, transform_indices = @transform_1, window_bounds = array<i64: 784, 20>}, {pipeline_mode = #tpu.pipeline_mode<synchronous>, transform_indices = @transform_2, window_bounds = array<i64: 1, 20>}, {pipeline_mode = #tpu.pipeline_mode<synchronous>, transform_indices = @transform_3, window_bounds = array<i64: 20, 2>}, {pipeline_mode = #tpu.pipeline_mode<synchronous>, transform_indices = @transform_4, window_bounds = array<i64: 1, 2>}, {transform_indices = @transform_5, window_bounds = array<i64: 8, 2>}]} {
    %c0 = arith.constant 0 : index
    %c0_0 = arith.constant 0 : index
    %0 = vector.load %arg1[%c0, %c0_0] : memref<8x784xbf16, #tpu.memory_space<vmem>>, vector<8x784xbf16>
    %c0_1 = arith.constant 0 : index
    %c0_2 = arith.constant 0 : index
    %1 = vector.load %arg2[%c0_1, %c0_2] : memref<784x20xbf16, #tpu.memory_space<vmem>>, vector<784x20xbf16>
    %cst = arith.constant dense<0.000000e+00> : vector<8x20xf32>
    %2 = tpu.matmul %0, %1, %cst {dimension_numbers = #tpu.dot_dimension_numbers<[1], [0], [0], [1], [0, 0, 1, 1], [], []>} : vector<8x784xbf16>, vector<784x20xbf16>, vector<8x20xf32> -> vector<8x20xf32>
    %c0_3 = arith.constant 0 : index
    %c0_4 = arith.constant 0 : index
    %3 = vector.load %arg3[%c0_3, %c0_4] : memref<1x20xf32, #tpu.memory_space<vmem>>, vector<1x20xf32>
    %4 = vector.broadcast %3 : vector<1x20xf32> to vector<8x20xf32>
    %5 = arith.addf %2, %4 : vector<8x20xf32>
    %c0_5 = arith.constant 0 : index
    %c0_6 = arith.constant 0 : index
    %6 = vector.load %arg4[%c0_5, %c0_6] : memref<20x2xf32, #tpu.memory_space<vmem>>, vector<20x2xf32>
    %cst_7 = arith.constant dense<0.000000e+00> : vector<8x2xf32>
    %7 = tpu.matmul %5, %6, %cst_7 {dimension_numbers = #tpu.dot_dimension_numbers<[1], [0], [0], [1], [0, 0, 1, 1], [], []>} : vector<8x20xf32>, vector<20x2xf32>, vector<8x2xf32> -> vector<8x2xf32>
    %c0_8 = arith.constant 0 : index
    %c0_9 = arith.constant 0 : index
    %8 = vector.load %arg5[%c0_8, %c0_9] : memref<1x2xf32, #tpu.memory_space<vmem>>, vector<1x2xf32>
    %9 = vector.broadcast %8 : vector<1x2xf32> to vector<8x2xf32>
    %10 = arith.addf %7, %9 : vector<8x2xf32>
    %c0_10 = arith.constant 0 : index
    %c0_11 = arith.constant 0 : index
    %11 = vector.load %arg6[%c0_10, %c0_11] : memref<8x2xf32, #tpu.memory_space<vmem>>, vector<8x2xf32>
    tpu.vector_store %arg6[%c0_10, %c0_11], %10 {strides = array<i32>} : memref<8x2xf32, #tpu.memory_space<vmem>>, vector<8x2xf32>,
    return
  }
  func.func @transform_0(%arg0: i32) -> (i32, i32) {
    %c0_i32 = arith.constant 0 : i32
    %c0_i32_0 = arith.constant 0 : i32
    return %arg0, %c0_i32 : i32, i32
  }
  func.func @transform_1(%arg0: i32) -> (i32, i32) {
    %c0_i32 = arith.constant 0 : i32
    %c0_i32_0 = arith.constant 0 : i32
    %c0_i32_1 = arith.constant 0 : i32
    return %c0_i32, %c0_i32_0 : i32, i32
  }
  func.func @transform_2(%arg0: i32) -> (i32, i32) {
    %c0_i32 = arith.constant 0 : i32
    %c0_i32_0 = arith.constant 0 : i32
    %c0_i32_1 = arith.constant 0 : i32
    return %c0_i32, %c0_i32_0 : i32, i32
  }
  func.func @transform_3(%arg0: i32) -> (i32, i32) {
    %c0_i32 = arith.constant 0 : i32
    %c0_i32_0 = arith.constant 0 : i32
    %c0_i32_1 = arith.constant 0 : i32
    return %c0_i32, %c0_i32_0 : i32, i32
  }
  func.func @transform_4(%arg0: i32) -> (i32, i32) {
    %c0_i32 = arith.constant 0 : i32
    %c0_i32_0 = arith.constant 0 : i32
    %c0_i32_1 = arith.constant 0 : i32
    return %c0_i32, %c0_i32_0 : i32, i32
  }
  func.func @transform_5(%arg0: i32) -> (i32, i32) {
    %c0_i32 = arith.constant 0 : i32
    %c0_i32_0 = arith.constant 0 : i32
    return %arg0, %c0_i32 : i32, i32
  }
}

</mosaic_0001>

<bundles_post_ra>
// kernel: tpu_custom_call.1
= control target key start
LH: loop header
LB: loop body
LE: loop exit
PB: predicated region body
PF: predicated region fallthrough
CT: control target
= control target key end

     0   :  { %v912_v41 = vmov 0.0   ;;  %vm913_vm0 = vmmov 0   ;;  %vm448_vm1 = vcmask 130048   ;;  %vm626_vm2 = vcmask 1043456   ;;  %s1123_s1 = inlined_call_operand.vmem [shape: bf16[784,20], index: 1, kind: input, shape index: {}]   ;;  %s1124_s0 = inlined_call_operand.vmem [shape: bf16[8,784], index: 0, kind: input, shape index: {}]   ;;  %s1125_s3 = inlined_call_operand.vmem [shape: f32[20,2], index: 3, kind: input, shape index: {}]   ;;  %s1126_s2 = inlined_call_operand.vmem [shape: f32[1,20], index: 2, kind: input, shape index: {}]   ;;  %s1127_s4 = inlined_call_operand.vmem [shape: f32[1,2], index: 4, kind: input, shape index: {}]   ;;  %s1128_s5 = inlined_call_operand.vmem [shape: f32[8,2], index: 5, kind: output, shape index: {}]  }
   0x1   :  { %v856_v0 = vld [vmem:[%s1123_s1 + $0x78] sm:$0xff]   ;;  %v860_v4 = vld [vmem:[%s1123_s1 + $0x70] sm:$0xff]   ;;  %v864_v8 = vld [vmem:[%s1123_s1 + $0x68] sm:$0xff]   ;;  %vm622_vm3 = vcmask 162816   ;;  %vm700_vm4 = vcmask 15360  }
   0x2   :  { %v857_v1 = vld [vmem:[%s1123_s1 + $0x38] sm:$0xff]   ;;  %767 = vmatprep.subr.bf16.mxu0 %v856_v0  ;;  %v861_v5 = vld [vmem:[%s1123_s1 + $0x30] sm:$0xff]   ;;  %v865_v9 = vld [vmem:[%s1123_s1 + $0x28] sm:$0xff]  }
   0x3   :  { %v858_v2 = vld [vmem:[%s1123_s1 + $0xf8] sm:$0xff]   ;;  %768 = vmatpush3.bf16.msra.mxu0 %v857_v1  ;;  %v862_v6 = vld [vmem:[%s1123_s1 + $0xf0] sm:$0xff]   ;;  %v866_v10 = vld [vmem:[%s1123_s1 + $0xe8] sm:$0xff]  }
   0x4   :  { %v859_v3 = vld [vmem:[%s1123_s1 + $0xb8] sm:$0xff]   ;;  %789 = vmatprep.subr.bf16.mxu1 %v858_v2  ;;  %769 = vmatprep.subr.bf16.mxu0 %v860_v4  ;;  %v863_v7 = vld [vmem:[%s1123_s1 + $0xb0] sm:$0xff]   ;;  %v867_v11 = vld [vmem:[%s1123_s1 + $0xa8] sm:$0xff]  }
   0x5   :  { %790 = vmatpush3.bf16.msra.mxu1 %v859_v3  ;;  %v868_v12 = vld [vmem:[%s1123_s1 + $0x60] sm:$0xff]   ;;  %v872_v16 = vld [vmem:[%s1123_s1 + $0x58] sm:$0xff]   ;;  %v876_v20 = vld [vmem:[%s1123_s1 + $0x50] sm:$0xff]  }
   0x6   :  { %791 = vmatprep.subr.bf16.mxu1 %v862_v6  ;;  %v869_v13 = vld [vmem:[%s1123_s1 + $0x20] sm:$0xff]   ;;  %v873_v17 = vld [vmem:[%s1123_s1 + $0x18] sm:$0xff]   ;;  %v877_v21 = vld [vmem:[%s1123_s1 + $0x10] sm:$0xff]  }
   0x7   :  { %770 = vmatpush3.bf16.msra.mxu0 %v861_v5  ;;  %v870_v14 = vld [vmem:[%s1123_s1 + $0xe0] sm:$0xff]   ;;  %v874_v18 = vld [vmem:[%s1123_s1 + $0xd8] sm:$0xff]   ;;  %v878_v22 = vld [vmem:[%s1123_s1 + $0xd0] sm:$0xff]  }
   0x8   :  { %771 = vmatprep.subr.bf16.mxu0 %v864_v8  ;;  %v871_v15 = vld [vmem:[%s1123_s1 + $0xa0] sm:$0xff]   ;;  %v875_v19 = vld [vmem:[%s1123_s1 + $0x98] sm:$0xff]   ;;  %v879_v23 = vld [vmem:[%s1123_s1 + $0x90] sm:$0xff]  }
   0x9   :  { %792 = vmatpush3.bf16.msra.mxu1 %v863_v7  ;;  %v880_v24 = vld [vmem:[%s1123_s1 + $0x48] sm:$0xff]   ;;  %v884_v28 = vld [vmem:[%s1123_s1 + $0x40] sm:$0xff]   ;;  %v891_v35 = vld [vmem:[%s1123_s1 + $0x178] sm:$0xff]  }
   0xa   :  { %793 = vmatprep.subr.bf16.mxu1 %v866_v10  ;;  %v881_v25 = vld [vmem:[%s1123_s1 + $0x8] sm:$0xff]   ;;  %v885_v29 = vld [vmem:[%s1123_s1] sm:$0xff]   ;;  %v894_v39 = vld [vmem:[%s1123_s1 + $0x138] sm:$0xff]  }
   0xb   :  { %772 = vmatpush3.bf16.msra.mxu0 %v865_v9  ;;  %v882_v26 = vld [vmem:[%s1123_s1 + $0xc8] sm:$0xff]   ;;  %v886_v30 = vld [vmem:[%s1123_s1 + $0xc0] sm:$0xff]   ;;  %v895_v40 = vld [vmem:[%s1123_s1 + $0x170] sm:$0xff]  }
   0xc   :  { %773 = vmatprep.subr.bf16.mxu0 %v868_v12  ;;  %v883_v27 = vld [vmem:[%s1123_s1 + $0x88] sm:$0xff]   ;;  %v21_v31 = vld [vmem:[%s1124_s0] sm:$0xff]  ;;  %v896_v42 = vld [vmem:[%s1123_s1 + $0x130] sm:$0xff]  }
   0xd   :  { %794 = vmatpush3.bf16.msra.mxu1 %v867_v11  ;;  %v707_v32 = vcombine.low %v21_v31, %v21_v31  ;;  %v708_v33 = vcombine.high %v21_v31, %v21_v31  ;;  %v890_v34 = vld [vmem:[%s1123_s1 + $0x80] sm:$0xff]   ;;  %v22_v36 = vld [vmem:[%s1124_s0 + $0x8] sm:$0xff]  ;;  %v901_v47 = vld [vmem:[%s1123_s1 + $0x158] sm:$0xff]  }
   0xe   :  { %795 = vmatprep.subr.bf16.mxu1 %v870_v14  ;;  %v709_v37 = vcombine.low %v22_v36, %v22_v36  ;;  %v710_v38 = vcombine.high %v22_v36, %v22_v36  ;;  %v897_v43 = vld [vmem:[%s1123_s1 + $0x168] sm:$0xff]   ;;  %v899_v45 = vld [vmem:[%s1123_s1 + $0x160] sm:$0xff]   ;;  %v902_v48 = vld [vmem:[%s1123_s1 + $0x118] sm:$0xff]  }
   0xf   :  { %774 = vmatpush3.bf16.msra.mxu0 %v869_v13  ;;  %484 = vmatprep.mubr.bf16.mxu0 %v708_v33  ;;  %v898_v44 = vld [vmem:[%s1123_s1 + $0x128] sm:$0xff]   ;;  %v900_v46 = vld [vmem:[%s1123_s1 + $0x120] sm:$0xff]   ;;  %v903_v49 = vld [vmem:[%s1123_s1 + $0x150] sm:$0xff]  }
  0x10   :  { %775 = vmatprep.subr.bf16.mxu0 %v872_v16  ;;  %524 = vmatprep.mubr.bf16.mxu1 %v710_v38  ;;  %v909_v50 = vld [vmem:[%s1123_s1 + $0x180] sm:$0xff]   ;;  %v23_v51 = vld [vmem:[%s1124_s0 + $0x10] sm:$0xff]  ;;  %v889_v52 = vld [vmem:[%s1124_s0 + $0x18] ss:$0 sps:$4 sm:$0xff]  }
  0x11   :  { %796 = vmatpush3.bf16.msra.mxu1 %v871_v15  ;;  %v712_v53 = vcombine.high %v23_v51, %v23_v51  ;;  %v904_v54 = vld [vmem:[%s1123_s1 + $0x110] sm:$0xff]   ;;  %v905_v55 = vld [vmem:[%s1123_s1 + $0x148] sm:$0xff]   ;;  %v907_v57 = vld [vmem:[%s1123_s1 + $0x140] sm:$0xff]   ;;  %v711_v59 = vcombine.low %v23_v51, %v23_v51 }
  0x12   :  { %797 = vmatprep.subr.bf16.mxu1 %v874_v18  ;;  %v906_v56 = vld [vmem:[%s1123_s1 + $0x108] sm:$0xff]   ;;  %v908_v58 = vld [vmem:[%s1123_s1 + $0x100] sm:$0xff]   ;;  %v614_v60 = vld [vmem:[%s1125_s3 + $0x10] sm:$0xf] }
  0x13   :  { %776 = vmatpush3.bf16.msra.mxu0 %v873_v17  ;;  %v613_v61 = vld [vmem:[%s1125_s3 + $0x8] sm:$0xff]  ;;  %v612_v62 = vld [vmem:[%s1125_s3] sm:$0xff] }
  0x14   :  { %777 = vmatprep.subr.bf16.mxu0 %v876_v20  ;;  %v706_v12 = vld [vmem:[%s1126_s2] ss:$0 sm:$0xff] }
  0x15   :  { %798 = vmatpush3.bf16.msra.mxu1 %v875_v19 }
  0x16   :  { %799 = vmatprep.subr.bf16.mxu1 %v878_v22 }
  0x17   :  { %778 = vmatpush3.bf16.msra.mxu0 %v877_v21 }
  0x18   :  { %779 = vmatprep.subr.bf16.mxu0 %v880_v24 }
  0x19   :  { %800 = vmatpush3.bf16.msra.mxu1 %v879_v23  ;;  %v764_v23 = vld [vmem:[%s1127_s4] ss:$0 sm:$0xff] }
  0x1a   :  { %801 = vmatprep.subr.bf16.mxu1 %v882_v26 }
  0x1b   :  { %780 = vmatpush3.bf16.msra.mxu0 %v881_v25 }
  0x1c   :  { %781 = vmatprep.subr.bf16.mxu0 %v884_v28 }
  0x1d   :  { %802 = vmatpush3.bf16.msra.mxu1 %v883_v27 }
  0x1e   :  { %803 = vmatprep.subr.bf16.mxu1 %v886_v30 }
  0x1f   :  { %782 = vmatpush3.bf16.msra.mxu0 %v885_v29 }
  0x20   :  { %811 = vmatprep.subr.bf16.mxu0 %v891_v35 }
  0x21   :  { %804 = vmatpush3.bf16.msra.mxu1 %v890_v34 }
  0x22   :  { %485 = vmatmul.mubr.bf16.vlgmr.msra.gmra.mxu0 %v707_v32  ;;  %839 = vmatprep.subr.bf16.mxu1 %v912_v41 }
  0x23   :  { %812 = vmatpush3.bf16.msra.mxu0 %v894_v39  ;;  %564 = vmatprep.mubr.bf16.mxu0 %v712_v53 }
  0x24   :  { %525 = vmatmul.mubr.bf16.vlgmr.msra.gmra.mxu1 %v709_v37  ;;  %813 = vmatprep.subr.bf16.mxu0 %v895_v40 }
  0x25   :  { %841 = vmatprep.mubr.msk.bf16.mxu1 %vm913_vm0, %v912_v41  ;;  %840 = vmatpush3.bf16.msra.mxu1 %v909_v50 }
  0x26   :  { %845 = vmatprep.subr.mxu1 %v912_v41 }
  0x27   :  { %814 = vmatpush3.bf16.msra.mxu0 %v896_v42 }
  0x28   :  { %815 = vmatprep.subr.bf16.mxu0 %v897_v43 }
  0x2b   :  { %816 = vmatpush3.bf16.msra.mxu0 %v898_v44 }
  0x2c   :  { %817 = vmatprep.subr.bf16.mxu0 %v899_v45  ;;  %842 = vmatmul.mubr.msk.bf16.vlgmr.msra.gmra.mxu1 %vm448_vm1, %v889_v52 }
  0x2d   :  { %851 = vmatprep.mubr.msk.f32.mxu1 %vm913_vm0, %v912_v41  ;;  %846 = vmatpush3.msk.msra.mxu1 %vm626_vm2, %v614_v60 }
  0x2e   :  { %847 = vmatprep.subr.mxu1 %v912_v41 }
  0x2f   :  { %818 = vmatpush3.bf16.msra.mxu0 %v900_v46  ;;  %848 = vmatpush3.msra.mxu1 %v613_v61 }
  0x30   :  { %819 = vmatprep.subr.bf16.mxu0 %v901_v47  ;;  %849 = vmatprep.subr.mxu1 %v912_v41 }
  0x31   :  { %850 = vmatpush3.msra.mxu1 %v612_v62 }
  0x33   :  { %820 = vmatpush3.bf16.msra.mxu0 %v902_v48 }
  0x34   :  { %821 = vmatprep.subr.bf16.mxu0 %v903_v49 }
  0x37   :  { %822 = vmatpush3.bf16.msra.mxu0 %v904_v54 }
  0x38   :  { %823 = vmatprep.subr.bf16.mxu0 %v905_v55 }
  0x3b   :  { %824 = vmatpush3.bf16.msra.mxu0 %v906_v56 }
  0x3c   :  { %825 = vmatprep.subr.bf16.mxu0 %v907_v57 }
  0x3f   :  { %826 = vmatpush3.bf16.msra.mxu0 %v908_v58 }
  0x42   :  { %565 = vmatmul.mubr.bf16.vlgmr.msra.gmra.mxu0 %v711_v59 }
  0xe2   :  { %v783_v63 = vpop.f32.mrf.mxu0 }
  0xe4   :  { %v784_v0 = vpop.f32.mrf.mxu0  ;;  %v805_v1 = vpop.f32.mrf.mxu1 }
  0xe5   :  { %v785_v11 = vadd.f32 %v784_v0, %v783_v63 }
  0xe6   :  { %v786_v2 = vpop.f32.mrf.mxu0  ;;  %v806_v3 = vpop.f32.mrf.mxu1 }
  0xe7   :  { %v487_v13 = vadd.f32 %v785_v11, %v706_v12  ;;  %v807_v14 = vadd.f32 %v806_v3, %v805_v1 }
  0xe8   :  { %v787_v4 = vpop.f32.mrf.mxu0  ;;  %v808_v5 = vpop.f32.mrf.mxu1 }
  0xe9   :  { %v527_v17 = vadd.f32 %v807_v14, %v487_v13 }
  0xea   :  { %v809_v6 = vpop.f32.mrf.mxu1 }
  0xec   :  { %v606_v7 = vpop.f32.mrf.mxu1 }
  0xee   :  { %v843_v8 = vpop.f32.mrf.mxu1 }
  0xf0   :  { %v609_v9 = vpop.f32.mrf.mxu1 }
  0xf2   :  { %v844_v10 = vpop.f32.mrf.mxu1 }
 0x102   :  { %v827_v15 = vpop.f32.mrf.mxu0 }
 0x104   :  { %v828_v16 = vpop.f32.mrf.mxu0 }
 0x105   :  { %v829_v18 = vadd.f32 %v828_v16, %v827_v15 }
 0x106   :  { %v830_v19 = vpop.f32.mrf.mxu0 }
 0x107   :  { %v567_v20 = vadd.f32 %v829_v18, %v527_v17 }
 0x108   :  { %v831_v21 = vpop.f32.mrf.mxu0 }
 0x109   :  { %v607_v22 = vadd.f32 %v606_v7, %v567_v20 }
 0x10b   :  { %852 = vmatmul.mubr.msk.f32.vlgmr.msra.gmra.mxu1 %vm622_vm3, %v607_v22 }
 0x1cb   :  { %v696_v24 = vpop.f32.mrf.mxu1 }
 0x1cc   :  { %v697_v25 = vadd.f32 %v764_v23, %v696_v24 }
 0x1cd   :  { %v853_v26 = vpop.f32.mrf.mxu1 }
 0x1ce   :  { %701 = vst.msk [vmem:[%s1128_s5] sm:$0xff] %vm700_vm4, %v697_v25 }

</bundles_post_ra>
